<compile_context>
chip_gen: v7x
topology: tpu7x:2x2x1
jax: 0.10.0
libtpu: 0.0.40
codegen_flags: <defaults>
</compile_context>

<pallas_src>
import jax
import jax.numpy as jnp
from jax.experimental import pallas as pl
from jax.experimental.pallas import tpu as pltpu
import numpy as np


def _build_pe(d_model: int, max_len: int = 5000, dtype=jnp.float32) -> jnp.ndarray:
    """Deterministic buffer construction, identical to the PyTorch __init__.

    Returns the same (max_len, 1, d_model) buffer the PyTorch module registers.
    """
    position = jnp.arange(0, max_len, dtype=jnp.float32)[:, None]          # (max_len, 1)
    div_term = jnp.exp(
        jnp.arange(0, d_model, 2, dtype=jnp.float32)
        * (-jnp.log(jnp.float32(10000.0)) / d_model)
    )                                                                       # (d_model//2,)
    pe = jnp.zeros((max_len, d_model), dtype=jnp.float32)
    pe = pe.at[:, 0::2].set(jnp.sin(position * div_term))
    pe = pe.at[:, 1::2].set(jnp.cos(position * div_term))
    # .unsqueeze(0).transpose(0, 1) -> (max_len, 1, d_model)
    return pe[:, None, :].astype(dtype)


def _pe_add_kernel(x_ref, pe_ref, o_ref):
    # x_ref:  (tS, B, D) tile of the activations.
    # pe_ref: (tS, D) tile of the positional-encoding table (same seq rows).
    # Broadcast pe over the batch (sublane) axis inside the kernel so the pe
    # HBM stream stays S*D bytes instead of S*B*D.
    x = x_ref[...]
    pe = pe_ref[...].astype(x.dtype)
    o_ref[...] = (x + pe[:, None, :]).astype(o_ref.dtype)


def _choose_block_rows(S, B, D, itemsize, target_bytes=2 << 20):
    """Pick a seq-tile so one x block is ~2 MiB (double-buffered -> good DMA/VPU overlap)."""
    rows = max(1, target_bytes // max(1, B * D * itemsize))
    rows = min(rows, S)
    return int(rows)


def positional_encoding_forward(x: jnp.ndarray,
                                pe: jnp.ndarray,
                                *,
                                block_rows: int | None = None,
                                donate_x: bool = False) -> jnp.ndarray:
    """x: (seq_len, batch, d_model); pe: (max_len, 1, d_model) or (max_len, d_model)."""
    S, B, D = x.shape

    # Accept the PyTorch-style (max_len, 1, d_model) buffer; use it as 2-D.
    if pe.ndim == 3:
        pe = jnp.squeeze(pe, axis=1)
    max_len, D_pe = pe.shape
    assert D_pe == D, f"d_model mismatch: x has {D}, pe has {D_pe}"
    assert S <= max_len, f"seq_len {S} exceeds max_len {max_len}"

    # Match dtypes once (no-op if already equal) so the add runs in x's dtype.
    pe = pe.astype(x.dtype)

    itemsize = jnp.dtype(x.dtype).itemsize
    tS = block_rows if block_rows is not None else _choose_block_rows(S, B, D, itemsize)
    # Round up to a multiple of 8 sublanes so the (tS, D) pe block is layout-legal;
    # partial trailing blocks of x / out are handled (masked) by the pipeline.
    tS = max(8, ((int(tS) + 7) // 8) * 8)
    tS = min(tS, ((S + 7) // 8) * 8)

    grid = (pl.cdiv(S, tS),)

    # VMEM budget: x + out blocks double-buffered plus the small pe tile.
    blk_x_bytes = tS * B * D * itemsize
    blk_pe_bytes = tS * D * itemsize
    need = 2 * (2 * blk_x_bytes + blk_pe_bytes)
    # Keep well under v7x's 64 MiB per-TC VMEM; generous headroom elsewhere.
    vmem_limit = int(min(max(need + (4 << 20), 16 << 20), 48 << 20))

    extra_kwargs = {}
    if donate_x:
        # Alias x with the output: avoids a second full-size activation buffer in HBM.
        extra_kwargs["input_output_aliases"] = {0: 0}

    return pl.pallas_call(
        _pe_add_kernel,
        out_shape=jax.ShapeDtypeStruct((S, B, D), x.dtype),
        grid_spec=pltpu.PrefetchScalarGridSpec(
            num_scalar_prefetch=0,
            grid=grid,
            in_specs=[
                # x: seq-tiled; (B, D) are full-dim trailing axes (legal per full-dim rule).
                pl.BlockSpec((tS, B, D), lambda s: (s, 0, 0)),
                # pe: window into the full (max_len, D) buffer — no wrapper slice/copy.
                pl.BlockSpec((tS, D), lambda s: (s, 0)),
            ],
            out_specs=pl.BlockSpec((tS, B, D), lambda s: (s, 0, 0)),
        ),
        compiler_params=pltpu.CompilerParams(
            dimension_semantics=("parallel",),   # independent tiles -> megacore-shardable on v7x
            vmem_limit_bytes=vmem_limit,
        ),
        **extra_kwargs,
    )(x, pe)


if __name__ == "__main__":
    d_model = 32
    max_len = 512        # small synthetic buffer (module default is 5000)
    seq_len = 128
    batch = 2

    key = jax.random.PRNGKey(0)
    x = jax.random.normal(key, (seq_len, batch, d_model), dtype=jnp.float32)
    pe = _build_pe(d_model, max_len)             # (max_len, 1, d_model), like the PyTorch buffer

    # Reference (plain JAX, mirrors the PyTorch forward exactly).
    ref = x + pe[:seq_len]

    # 1) Exercise the multi-step pipelined path explicitly: tS=32 -> grid=(4,).
    out = positional_encoding_forward(x, pe, block_rows=32)
    out = jax.block_until_ready(out)
    np.testing.assert_allclose(np.asarray(out), np.asarray(ref), rtol=1e-6, atol=1e-6)

    # 2) Default auto-sized tiles (~2 MiB target; collapses to one block at this tiny shape).
    out2 = jax.block_until_ready(positional_encoding_forward(x, pe))
    np.testing.assert_allclose(np.asarray(out2), np.asarray(ref), rtol=1e-6, atol=1e-6)

    print("KERNEL_OK")
</pallas_src>

<mosaic_0001>
module attributes {stable_mosaic.version = 11 : i64} {
  func.func @_pe_add_kernel(%arg0: i32, %arg1: memref<32x2x32xf32, #tpu.memory_space<vmem>>, %arg2: memref<32x32xf32, #tpu.memory_space<vmem>>, %arg3: memref<32x2x32xf32, #tpu.memory_space<vmem>>) attributes {dimension_semantics = [#tpu.dimension_semantics<parallel>], iteration_bounds = array<i64: 4>, scalar_prefetch = 0 : i64, scratch_operands = 0 : i64, tpu.core_type = #tpu.core_type<tc>, window_params = [{transform_indices = @transform_0, window_bounds = array<i64: 32, 2, 32>}, {transform_indices = @transform_1, window_bounds = array<i64: 32, 32>}, {transform_indices = @transform_2, window_bounds = array<i64: 32, 2, 32>}]} {
    %c0 = arith.constant 0 : index
    %c0_0 = arith.constant 0 : index
    %c0_1 = arith.constant 0 : index
    %0 = vector.load %arg1[%c0, %c0_0, %c0_1] : memref<32x2x32xf32, #tpu.memory_space<vmem>>, vector<32x2x32xf32>
    %c0_2 = arith.constant 0 : index
    %c0_3 = arith.constant 0 : index
    %1 = vector.load %arg2[%c0_2, %c0_3] : memref<32x32xf32, #tpu.memory_space<vmem>>, vector<32x32xf32>
    %2 = vector.shape_cast %1 : vector<32x32xf32> to vector<32x1x32xf32>
    %3 = vector.broadcast %2 : vector<32x1x32xf32> to vector<32x2x32xf32>
    %4 = arith.addf %0, %3 : vector<32x2x32xf32>
    %c0_4 = arith.constant 0 : index
    %c0_5 = arith.constant 0 : index
    %c0_6 = arith.constant 0 : index
    %5 = vector.load %arg3[%c0_4, %c0_5, %c0_6] : memref<32x2x32xf32, #tpu.memory_space<vmem>>, vector<32x2x32xf32>
    tpu.vector_store %arg3[%c0_4, %c0_5, %c0_6], %4 {strides = array<i32>} : memref<32x2x32xf32, #tpu.memory_space<vmem>>, vector<32x2x32xf32>,
    return
  }
  func.func @transform_0(%arg0: i32) -> (i32, i32, i32) {
    %c0_i32 = arith.constant 0 : i32
    %c0_i32_0 = arith.constant 0 : i32
    %c0_i32_1 = arith.constant 0 : i32
    return %arg0, %c0_i32, %c0_i32_0 : i32, i32, i32
  }
  func.func @transform_1(%arg0: i32) -> (i32, i32) {
    %c0_i32 = arith.constant 0 : i32
    %c0_i32_0 = arith.constant 0 : i32
    return %arg0, %c0_i32 : i32, i32
  }
  func.func @transform_2(%arg0: i32) -> (i32, i32, i32) {
    %c0_i32 = arith.constant 0 : i32
    %c0_i32_0 = arith.constant 0 : i32
    %c0_i32_1 = arith.constant 0 : i32
    return %arg0, %c0_i32, %c0_i32_0 : i32, i32, i32
  }
}

</mosaic_0001>

<bundles_post_ra>
// kernel: tpu_custom_call.1
= control target key start
LH: loop header
LB: loop body
LE: loop exit
PB: predicated region body
PF: predicated region fallthrough
CT: control target
= control target key end

     0   :  { %s744_s9 = smov 0   ;;  %s930_s0 = inlined_call_operand.vmem [shape: f32[128,2,32], index: 0, kind: input, shape index: {}]   ;;  %s931_s1 = inlined_call_operand.vmem [shape: f32[512,32], index: 1, kind: input, shape index: {}]   ;;  %s932_s2 = inlined_call_operand.vmem [shape: f32[128,2,32], index: 2, kind: output, shape index: {}]  }
   0x1 LB: > { %s698_s10 = sadd.s32 4294967295, %s726_s9   ;;  %p702_p0 = scmp.ge.s32.totalorder %s726_s9, 1  ;;  %s726_s9 = sphi %s744_s9, %s12_s9  }
   0x2   : > { %p124_p1 = scmp.lt.s32.totalorder %s726_s9, 5 }
   0x4   : > { %p125_p2 = pnand %p702_p0, %p124_p1 }
   0x5   : > { %s703_s11 = sshll.u32 (!%p125_p2), %s698_s10, 5  ;;  %s705_s12 = sshll.u32 (!%p125_p2), %s698_s10, 2  ;;  %v213_v0 = vlaneseq (!%p125_p2)  ;;  %v728_v1 = vmov (!%p125_p2), 1966171168   ;;  %vm597_vm0 = vcmask (!%p125_p2), 254976  }
   0x6   : > { %128 = sbr.rel (%p125_p2) target bundleno = 55 (0x37), region = 28  ;;  %p152_p3 = scmp.lt.s32.totalorder (!%p125_p2), %s703_s11, 127  ;;  %v211_v2 = vunpack.c.l.s4 (!%p125_p2), %v728_v1 }
   0x7   : > { %p158_p4 = scmp.lt.s32.totalorder (!%p125_p2), %s705_s12, 63  ;;  %v214_v3 = vshrl.u32 (!%p125_p2), %v213_v0, 7 }
   0x8   : > { %v212_v4 = vunpack.c.0.s8 (!%p125_p2), %v211_v2 }
   0x9   : > { %v766_v8 = vsub.s32 (!%p125_p2), 0, %v214_v3 }
   0xa   : > { %v752_v5 = vsub.s32 (!%p125_p2), %v212_v4, %v214_v3 }
   0xd   : > { %s934_s11 = smov (!%p152_p3, %s703_s11), 127  ;;  %s936_s12 = smov (!%p158_p4, %s705_s12), 63 }
   0xe   : > { %s704_s13 = sshll.u32 %s934_s11, 1  ;;  %s706_s14 = sshll.u32 %s936_s12, 3 }
   0xf   : > { %s757_s17 = scalar_lea.vmem %s931_s1, %s706_s14  ;;  %s763_s20 = scalar_lea.vmem %s930_s0, %s704_s13 }
  0x10   : > { %v201_v6 = vld [vmem:[%s757_s17] sm:$0xff]  ;;  %v202_v10 = vld [vmem:[%s757_s17 + $0x8] sm:$0xff]  ;;  %s779_s23 = scalar_lea.vmem %s932_s2, %s704_s13  ;;  %v177_v36 = vld [vmem:[%s763_s20 + $0x10] sm:$0x3] }
  0x11   : > { %v216_v7 = vrot.slane %v201_v6, %v752_v5  ;;  %v209_v9 = vcombine.high %v201_v6, %v201_v6  ;;  %v265_v14 = vrot.slane %v202_v10, %v752_v5  ;;  %v169_v15 = vld [vmem:[%s763_s20] sm:$0x3]  ;;  %v258_v16 = vcombine.high %v202_v10, %v202_v10  ;;  %v170_v21 = vld [vmem:[%s763_s20 + $0x2] sm:$0x3]  ;;  %v171_v22 = vld [vmem:[%s763_s20 + $0x4] sm:$0x3] }
  0x12   : > { %v173_v31 = vld [vmem:[%s763_s20 + $0x8] sm:$0x3]  ;;  %v172_v32 = vld [vmem:[%s763_s20 + $0x6] sm:$0x3]  ;;  %v174_v41 = vld [vmem:[%s763_s20 + $0xa] sm:$0x3] }
  0x13   : > { %v232_v11 = vrot.slane %v216_v7, %v752_v5  ;;  %v224_v12 = vcombine.high %v216_v7, %v216_v7  ;;  %v223_v13 = vrot.slane %v209_v9, %v752_v5  ;;  %v281_v24 = vrot.slane %v265_v14, %v752_v5  ;;  %v175_v42 = vld [vmem:[%s763_s20 + $0xc] sm:$0x3]  ;;  %v178_v48 = vld [vmem:[%s763_s20 + $0x12] sm:$0x3]  ;;  %v176_v50 = vld [vmem:[%s763_s20 + $0xe] sm:$0x3] }
  0x14   : > { %v273_v25 = vcombine.high %v265_v14, %v265_v14  ;;  %v272_v26 = vrot.slane %v258_v16, %v752_v5  ;;  %v203_v54 = vld [vmem:[%s757_s17 + $0x10] sm:$0xff]  ;;  %v181_v3 = vld [vmem:[%s763_s20 + $0x18] sm:$0x3]  ;;  %v183_v14 = vld [vmem:[%s763_s20 + $0x1c] sm:$0x3] }
  0x15   : > { %v408_v17 = vrot.slane %v232_v11, %v766_v8  ;;  %v246_v18 = vrot.slane %v224_v12, %v752_v5  ;;  %v254_v19 = vcombine.high %v232_v11, %v232_v11  ;;  %v239_v20 = vrot.slane %v223_v13, %v752_v5  ;;  %v179_v58 = vld [vmem:[%s763_s20 + $0x14] sm:$0x3]  ;;  %v180_v62 = vld [vmem:[%s763_s20 + $0x16] sm:$0x3] }
  0x16   : > { %v225_v23 = vcombine.high %v223_v13, %v223_v13  ;;  %v440_v37 = vrot.slane %v281_v24, %v766_v8  ;;  %v295_v43 = vrot.slane %v273_v25, %v752_v5  ;;  %v303_v53 = vcombine.high %v281_v24, %v281_v24  ;;  %v182_v13 = vld [vmem:[%s763_s20 + $0x1a] sm:$0x3] }
  0x17   : > { %v565_v27 = vadd.f32 %v408_v17, %v169_v15  ;;  %v412_v28 = vrot.slane %v246_v18, %v766_v8  ;;  %v416_v29 = vrot.slane %v254_v19, %v766_v8  ;;  %v256_v30 = vcombine.high %v246_v18, %v246_v18 }
  0x18   : > { %v424_v33 = vrot.slane %v239_v20, %v766_v8  ;;  %v253_v34 = vrot.slane %v225_v23, %v752_v5  ;;  %v255_v35 = vcombine.high %v239_v20, %v239_v20  ;;  %v573_v51 = vadd.f32 %v440_v37, %v177_v36  ;;  %v184_v23 = vld [vmem:[%s763_s20 + $0x1e] sm:$0x3] }
  0x19   : > { %598 = vst.msk [vmem:[%s779_s23] sm:$0x3] %vm597_vm0, %v565_v27  ;;  %v566_v38 = vadd.f32 %v412_v28, %v170_v21  ;;  %v567_v39 = vadd.f32 %v416_v29, %v171_v22  ;;  %v420_v40 = vrot.slane %v256_v30, %v766_v8  ;;  %v444_v52 = vrot.slane %v295_v43, %v766_v8  ;;  %v185_v22 = vld [vmem:[%s763_s20 + $0x20] sm:$0x3] }
  0x1a   : > { %v569_v44 = vadd.f32 %v424_v33, %v173_v31  ;;  %v428_v45 = vrot.slane %v253_v34, %v766_v8  ;;  %v432_v46 = vrot.slane %v255_v35, %v766_v8  ;;  %v257_v47 = vcombine.high %v253_v34, %v253_v34  ;;  %606 = vst.msk [vmem:[%s779_s23 + $0x10] sm:$0x3] %vm597_vm0, %v573_v51  ;;  %v186_v31 = vld [vmem:[%s763_s20 + $0x22] sm:$0x3] }
  0x1b   : > { %599 = vst.msk [vmem:[%s779_s23 + $0x2] sm:$0x3] %vm597_vm0, %v566_v38  ;;  %600 = vst.msk [vmem:[%s779_s23 + $0x4] sm:$0x3] %vm597_vm0, %v567_v39  ;;  %v568_v49 = vadd.f32 %v420_v40, %v172_v32  ;;  %v305_v59 = vcombine.high %v295_v43, %v295_v43  ;;  %v574_v60 = vadd.f32 %v444_v52, %v178_v48  ;;  %v187_v32 = vld [vmem:[%s763_s20 + $0x24] sm:$0x3] }
  0x1c   : > { %602 = vst.msk [vmem:[%s779_s23 + $0x8] sm:$0x3] %vm597_vm0, %v569_v44  ;;  %v570_v55 = vadd.f32 %v428_v45, %v174_v41  ;;  %v571_v56 = vadd.f32 %v432_v46, %v175_v42  ;;  %v436_v57 = vrot.slane %v257_v47, %v766_v8  ;;  %v448_v61 = vrot.slane %v303_v53, %v766_v8  ;;  %v189_v38 = vld [vmem:[%s763_s20 + $0x28] sm:$0x3]  ;;  %v188_v40 = vld [vmem:[%s763_s20 + $0x26] sm:$0x3] }
  0x1d   : > { %601 = vst.msk [vmem:[%s779_s23 + $0x6] sm:$0x3] %vm597_vm0, %v568_v49  ;;  %v288_v63 = vrot.slane %v272_v26, %v752_v5  ;;  %v274_v0 = vcombine.high %v272_v26, %v272_v26  ;;  %v452_v2 = vrot.slane %v305_v59, %v766_v8  ;;  %v314_v4 = vrot.slane %v203_v54, %v752_v5  ;;  %v204_v44 = vld [vmem:[%s757_s17 + $0x18] sm:$0xff]  ;;  %v190_v48 = vld [vmem:[%s763_s20 + $0x2a] sm:$0x3] }
  0x1e   : > { %603 = vst.msk [vmem:[%s779_s23 + $0xa] sm:$0x3] %vm597_vm0, %v570_v55  ;;  %604 = vst.msk [vmem:[%s779_s23 + $0xc] sm:$0x3] %vm597_vm0, %v571_v56  ;;  %v572_v1 = vadd.f32 %v436_v57, %v176_v50  ;;  %v307_v6 = vcombine.high %v203_v54, %v203_v54  ;;  %v575_v7 = vadd.f32 %v448_v61, %v179_v58  ;;  %v191_v49 = vld [vmem:[%s763_s20 + $0x2c] sm:$0x3] }
  0x1f   : > { %607 = vst.msk [vmem:[%s779_s23 + $0x12] sm:$0x3] %vm597_vm0, %v574_v60  ;;  %v456_v9 = vrot.slane %v288_v63, %v766_v8  ;;  %v302_v10 = vrot.slane %v274_v0, %v752_v5  ;;  %v304_v11 = vcombine.high %v288_v63, %v288_v63  ;;  %v576_v12 = vadd.f32 %v452_v2, %v180_v62  ;;  %v192_v56 = vld [vmem:[%s763_s20 + $0x2e] sm:$0x3]  ;;  %v193_v63 = vld [vmem:[%s763_s20 + $0x30] sm:$0x3] }
  0x20   : > { %605 = vst.msk [vmem:[%s779_s23 + $0xe] sm:$0x3] %vm597_vm0, %v572_v1  ;;  %v330_v15 = vrot.slane %v314_v4, %v752_v5  ;;  %v322_v16 = vcombine.high %v314_v4, %v314_v4  ;;  %v321_v17 = vrot.slane %v307_v6, %v752_v5  ;;  %608 = vst.msk [vmem:[%s779_s23 + $0x14] sm:$0x3] %vm597_vm0, %v575_v7  ;;  %v194_v6 = vld [vmem:[%s763_s20 + $0x32] sm:$0x3] }
  0x21   : > { %v577_v18 = vadd.f32 %v456_v9, %v181_v3  ;;  %v460_v19 = vrot.slane %v302_v10, %v766_v8  ;;  %v464_v20 = vrot.slane %v304_v11, %v766_v8  ;;  %v306_v21 = vcombine.high %v302_v10, %v302_v10  ;;  %609 = vst.msk [vmem:[%s779_s23 + $0x16] sm:$0x3] %vm597_vm0, %v576_v12  ;;  %v195_v7 = vld [vmem:[%s763_s20 + $0x34] sm:$0x3] }
  0x22   : > { %v472_v24 = vrot.slane %v330_v15, %v766_v8  ;;  %v344_v25 = vrot.slane %v322_v16, %v752_v5  ;;  %v352_v26 = vcombine.high %v330_v15, %v330_v15  ;;  %v337_v27 = vrot.slane %v321_v17, %v752_v5 }
  0x23   : > { %610 = vst.msk [vmem:[%s779_s23 + $0x18] sm:$0x3] %vm597_vm0, %v577_v18  ;;  %v578_v28 = vadd.f32 %v460_v19, %v182_v13  ;;  %v579_v29 = vadd.f32 %v464_v20, %v183_v14  ;;  %v468_v30 = vrot.slane %v306_v21, %v766_v8  ;;  %v323_v33 = vcombine.high %v321_v17, %v321_v17  ;;  %v196_v13 = vld [vmem:[%s763_s20 + $0x36] sm:$0x3]  ;;  %v197_v19 = vld [vmem:[%s763_s20 + $0x38] sm:$0x3] }
  0x24   : > { %v581_v34 = vadd.f32 %v472_v24, %v185_v22  ;;  %v476_v35 = vrot.slane %v344_v25, %v766_v8  ;;  %v480_v36 = vrot.slane %v352_v26, %v766_v8  ;;  %v354_v37 = vcombine.high %v344_v25, %v344_v25  ;;  %v198_v24 = vld [vmem:[%s763_s20 + $0x3a] sm:$0x3]  ;;  %v199_v25 = vld [vmem:[%s763_s20 + $0x3c] sm:$0x3] }
  0x25   : > { %611 = vst.msk [vmem:[%s779_s23 + $0x1a] sm:$0x3] %vm597_vm0, %v578_v28  ;;  %612 = vst.msk [vmem:[%s779_s23 + $0x1c] sm:$0x3] %vm597_vm0, %v579_v29  ;;  %v580_v39 = vadd.f32 %v468_v30, %v184_v23  ;;  %v488_v41 = vrot.slane %v337_v27, %v766_v8  ;;  %v351_v42 = vrot.slane %v323_v33, %v752_v5 }
  0x26   : > { %v353_v43 = vcombine.high %v337_v27, %v337_v27  ;;  %614 = vst.msk [vmem:[%s779_s23 + $0x20] sm:$0x3] %vm597_vm0, %v581_v34  ;;  %v582_v45 = vadd.f32 %v476_v35, %v186_v31  ;;  %v583_v46 = vadd.f32 %v480_v36, %v187_v32  ;;  %v484_v47 = vrot.slane %v354_v37, %v766_v8 }
  0x27   : > { %v363_v50 = vrot.slane %v204_v44, %v752_v5  ;;  %613 = vst.msk [vmem:[%s779_s23 + $0x1e] sm:$0x3] %vm597_vm0, %v580_v39  ;;  %v585_v51 = vadd.f32 %v488_v41, %v189_v38  ;;  %v492_v52 = vrot.slane %v351_v42, %v766_v8  ;;  %v355_v54 = vcombine.high %v351_v42, %v351_v42 }
  0x28   : > { %v496_v53 = vrot.slane %v353_v43, %v766_v8  ;;  %615 = vst.msk [vmem:[%s779_s23 + $0x22] sm:$0x3] %vm597_vm0, %v582_v45  ;;  %616 = vst.msk [vmem:[%s779_s23 + $0x24] sm:$0x3] %vm597_vm0, %v583_v46  ;;  %v584_v55 = vadd.f32 %v484_v47, %v188_v40  ;;  %v356_v59 = vcombine.high %v204_v44, %v204_v44 }
  0x29   : > { %v379_v57 = vrot.slane %v363_v50, %v752_v5  ;;  %v371_v58 = vcombine.high %v363_v50, %v363_v50  ;;  %618 = vst.msk [vmem:[%s779_s23 + $0x28] sm:$0x3] %vm597_vm0, %v585_v51  ;;  %v586_v60 = vadd.f32 %v492_v52, %v190_v48  ;;  %v500_v62 = vrot.slane %v355_v54, %v766_v8 }
  0x2a   : > { %v587_v61 = vadd.f32 %v496_v53, %v191_v49  ;;  %617 = vst.msk [vmem:[%s779_s23 + $0x26] sm:$0x3] %vm597_vm0, %v584_v55  ;;  %v370_v3 = vrot.slane %v356_v59, %v752_v5 }
  0x2b   : > { %v504_v0 = vrot.slane %v379_v57, %v766_v8  ;;  %v393_v1 = vrot.slane %v371_v58, %v752_v5  ;;  %v401_v2 = vcombine.high %v379_v57, %v379_v57  ;;  %619 = vst.msk [vmem:[%s779_s23 + $0x2a] sm:$0x3] %vm597_vm0, %v586_v60  ;;  %v588_v4 = vadd.f32 %v500_v62, %v192_v56 }
  0x2c   : > { %620 = vst.msk [vmem:[%s779_s23 + $0x2c] sm:$0x3] %vm597_vm0, %v587_v61  ;;  %v386_v14 = vrot.slane %v370_v3, %v752_v5  ;;  %v372_v15 = vcombine.high %v370_v3, %v370_v3 }
  0x2d   : > { %v589_v9 = vadd.f32 %v504_v0, %v193_v63  ;;  %v508_v10 = vrot.slane %v393_v1, %v766_v8  ;;  %v512_v11 = vrot.slane %v401_v2, %v766_v8  ;;  %v403_v12 = vcombine.high %v393_v1, %v393_v1  ;;  %621 = vst.msk [vmem:[%s779_s23 + $0x2e] sm:$0x3] %vm597_vm0, %v588_v4 }
  0x2e   : > { %v520_v20 = vrot.slane %v386_v14, %v766_v8  ;;  %v400_v21 = vrot.slane %v372_v15, %v752_v5  ;;  %v402_v22 = vcombine.high %v386_v14, %v386_v14  ;;  %v200_v5 = vld [vmem:[%s763_s20 + $0x3e] sm:$0x3] }
  0x2f   : > { %622 = vst.msk [vmem:[%s779_s23 + $0x30] sm:$0x3] %vm597_vm0, %v589_v9  ;;  %v590_v16 = vadd.f32 %v508_v10, %v194_v6  ;;  %v591_v17 = vadd.f32 %v512_v11, %v195_v7  ;;  %v516_v18 = vrot.slane %v403_v12, %v766_v8 }
  0x30   : > { %v593_v26 = vadd.f32 %v520_v20, %v197_v19  ;;  %v524_v27 = vrot.slane %v400_v21, %v766_v8  ;;  %v528_v28 = vrot.slane %v402_v22, %v766_v8  ;;  %v404_v29 = vcombine.high %v400_v21, %v400_v21 }
  0x31   : > { %623 = vst.msk [vmem:[%s779_s23 + $0x32] sm:$0x3] %vm597_vm0, %v590_v16  ;;  %624 = vst.msk [vmem:[%s779_s23 + $0x34] sm:$0x3] %vm597_vm0, %v591_v17  ;;  %v592_v23 = vadd.f32 %v516_v18, %v196_v13 }
  0x32   : > { %626 = vst.msk [vmem:[%s779_s23 + $0x38] sm:$0x3] %vm597_vm0, %v593_v26  ;;  %v594_v30 = vadd.f32 %v524_v27, %v198_v24  ;;  %v595_v31 = vadd.f32 %v528_v28, %v199_v25  ;;  %v532_v32 = vrot.slane %v404_v29, %v766_v8 }
  0x33   : > { %625 = vst.msk [vmem:[%s779_s23 + $0x36] sm:$0x3] %vm597_vm0, %v592_v23 }
  0x34   : > { %627 = vst.msk [vmem:[%s779_s23 + $0x3a] sm:$0x3] %vm597_vm0, %v594_v30  ;;  %628 = vst.msk [vmem:[%s779_s23 + $0x3c] sm:$0x3] %vm597_vm0, %v595_v31  ;;  %v596_v33 = vadd.f32 %v532_v32, %v200_v5 }
  0x36   : > { %629 = vst.msk [vmem:[%s779_s23 + $0x3e] sm:$0x3] %vm597_vm0, %v596_v33 }
  0x37 PF: > { %s12_s9 = sadd.s32 1, %s726_s9  }
  0x38   : > { %p9_p5 = scmp.ge.s32.totalorder %s12_s9, 6  }
  0x3a   :  { %11 = sbr.rel (!%p9_p5) target bundleno = 1 (0x1), region = 61 }

</bundles_post_ra>
